<compile_context>
chip_gen: v5e
topology: v5e:2x2
jax: 0.10.0
libtpu: 0.0.40
codegen_flags: <defaults>
</compile_context>

<pallas_src>
import math

import jax
import jax.numpy as jnp
from jax.experimental import pallas as pl
from jax.experimental.pallas import tpu as pltpu

SIZE = 6


def _fused_kernel(gw_ref, mx_ref, av_ref,
                  w1a_ref, w1m_ref,
                  alpha_a_ref, alpha_m_ref, beta_ref,
                  diff_out_ref, gdiff_ref):
    gw = gw_ref[...]          # (SIZE, bb)   batch on lanes
    mx = mx_ref[...]          # (SIZE, bb)
    av = av_ref[...]          # (SIZE, bb)

    def pairwise(x):
        # p[i, j, b] = |x[j, b] - x[i, b]|   (symmetric in i, j)
        return jnp.abs(x[None, :, :] - x[:, None, :])

    g_avg = pairwise(av)      # (SIZE, SIZE, bb)
    g_max = pairwise(mx)      # (SIZE, SIZE, bb)
    g_dif = pairwise(gw)      # (SIZE, SIZE, bb)

    # g_diff = 0.5 * sum_{i,j} d * tanh(100 d)      -> (1, bb), lane dense
    dt = g_dif * jnp.tanh(100.0 * g_dif)
    gdiff_ref[...] = 0.5 * jnp.sum(jnp.sum(dt, axis=0), axis=0, keepdims=True)

    # Folded conv chains: per out-channel c, y3[c] = alpha[c] * s + beta[c]
    # with s = sum_{i,j} M[i,j] * w1[i,j].
    s_avg = jnp.sum(jnp.sum(g_avg * w1a_ref[...], axis=0), axis=0, keepdims=True)
    s_max = jnp.sum(jnp.sum(g_max * w1m_ref[...], axis=0), axis=0, keepdims=True)
    # dif[c, b] = alpha_a[c]*s_avg[b] + alpha_m[c]*s_max[b] + beta[c]
    dif = (alpha_a_ref[...] * s_avg
           + alpha_m_ref[...] * s_max
           + beta_ref[...])                          # (SIZE, bb)

    # diff_out[i, b] = sum_j g_dif[i, j, b] * dif[j, b]
    # g_dif is symmetric, so reduce over the (cheap) leading axis.
    diff_out_ref[...] = jnp.sum(g_dif * dif[:, None, :], axis=0)   # (SIZE, bb)


def fused_forward(g_weight, max_list, avg_list, params, *, block_b=1024):
    """Forward pass of `Fused`: returns (diff_output (B, SIZE), g_diff (B,))."""
    assert SIZE == 6, "conv-chain algebraic fold is only valid for SIZE == 6"
    (w1a, b1a, w2a, b2a, w3a, b3a,
     w1m, b1m, w2m, b2m, w3m, b3m) = params
    B = g_weight.shape[0]

    # --- trace-time algebraic fold of the two conv stacks --------------------
    def fold(w2, b1, b2, w3, b3):
        alpha = w2[1, 1] * w3[:, 1, 1]                                   # (SIZE,)
        beta = (b3 + b2 * jnp.sum(w3, axis=(1, 2))
                + b1 * jnp.sum(w2) * w3[:, 1, 1])                        # (SIZE,)
        return alpha, beta

    alpha_a, beta_a = fold(w2a, b1a, b2a, w3a, b3a)
    alpha_m, beta_m = fold(w2m, b1m, b2m, w3m, b3m)
    beta_sum = beta_a + beta_m

    # --- lane-dense layout: batch on the lane axis ----------------------------
    gw_t = jnp.asarray(g_weight, jnp.float32).T      # (SIZE, B)
    mx_t = jnp.asarray(max_list, jnp.float32).T
    av_t = jnp.asarray(avg_list, jnp.float32).T

    if B > block_b:
        bb = max(128, (block_b // 128) * 128)        # lane-aligned block
        n_blocks = (B + bb - 1) // bb
        B_pad = n_blocks * bb
        if B_pad != B:
            pad = ((0, 0), (0, B_pad - B))
            gw_t = jnp.pad(gw_t, pad)
            mx_t = jnp.pad(mx_t, pad)
            av_t = jnp.pad(av_t, pad)
    else:
        bb = B
        B_pad = B
        n_blocks = 1

    data_spec = pl.BlockSpec((SIZE, bb), lambda i: (0, i))
    gdiff_spec = pl.BlockSpec((1, bb), lambda i: (0, i))
    w_spec = pl.BlockSpec((SIZE, SIZE, 1), lambda i: (0, 0, 0))   # resident
    v_spec = pl.BlockSpec((SIZE, 1), lambda i: (0, 0))            # resident

    diff_out_t, gdiff = pl.pallas_call(
        _fused_kernel,
        grid=(n_blocks,),
        out_shape=(jax.ShapeDtypeStruct((SIZE, B_pad), jnp.float32),
                   jax.ShapeDtypeStruct((1, B_pad), jnp.float32)),
        in_specs=[data_spec, data_spec, data_spec,
                  w_spec, w_spec, v_spec, v_spec, v_spec],
        out_specs=(data_spec, gdiff_spec),
        compiler_params=pltpu.CompilerParams(
            dimension_semantics=("parallel",),
            vmem_limit_bytes=32 * 1024 * 1024),
    )(gw_t, mx_t, av_t,
      jnp.asarray(w1a, jnp.float32).reshape(SIZE, SIZE, 1),
      jnp.asarray(w1m, jnp.float32).reshape(SIZE, SIZE, 1),
      jnp.asarray(alpha_a, jnp.float32).reshape(SIZE, 1),
      jnp.asarray(alpha_m, jnp.float32).reshape(SIZE, 1),
      jnp.asarray(beta_sum, jnp.float32).reshape(SIZE, 1))

    diff_out = diff_out_t[:, :B].T                   # (B, SIZE)
    g_diff = gdiff[0, :B]                            # (B,)
    return diff_out, g_diff


def ref_forward(g_weight, max_list, avg_list, params):
    """Pure-JAX reference using lax conv (mirrors the PyTorch forward)."""
    (w1a, b1a, w2a, b2a, w3a, b3a,
     w1m, b1m, w2m, b2m, w3m, b3m) = params

    def pw(x):
        return jnp.abs(x[:, None, :] - x[:, :, None])

    ga, gm, gd = pw(avg_list), pw(max_list), pw(g_weight)
    g_diff = 0.5 * jnp.sum(gd * jnp.tanh(100.0 * gd), axis=(1, 2))

    def chain(M, w1, b1, w2, b2, w3, b3):
        x = M[:, None, :, :]                                        # NCHW
        y = jax.lax.conv_general_dilated(x, w1[None, None], (6, 6),
                                         [(6, 6), (6, 6)]) + b1
        y = jax.lax.conv_general_dilated(y, w2[None, None], (3, 3),
                                         [(3, 3), (3, 3)]) + b2
        y = jax.lax.conv_general_dilated(y, w3[:, None], (1, 1), 'VALID')
        return y + b3[None, :, None, None]                          # (B,6,1,1)

    a = chain(ga, w1a, b1a, w2a, b2a, w3a, b3a)
    m = chain(gm, w1m, b1m, w2m, b2m, w3m, b3m)
    dif = (a + m)[:, :, 0, :]                                       # (B,6,1)
    out = jnp.matmul(gd, dif)[:, :, 0]                              # (B,6)
    return out, g_diff


def init_params(key):
    """Deterministic synthetic Conv2d params (PyTorch-like uniform(-1/sqrt(fan_in)))."""
    ks = jax.random.split(key, 12)

    def u(k, shape, fan_in):
        bound = 1.0 / math.sqrt(fan_in)
        return jax.random.uniform(k, shape, jnp.float32, -bound, bound)

    w1a = u(ks[0], (SIZE, SIZE), SIZE * SIZE); b1a = u(ks[1], (), SIZE * SIZE)
    w2a = u(ks[2], (3, 3), 9);                 b2a = u(ks[3], (), 9)
    w3a = u(ks[4], (SIZE, 3, 3), 9);           b3a = u(ks[5], (SIZE,), 9)
    w1m = u(ks[6], (SIZE, SIZE), SIZE * SIZE); b1m = u(ks[7], (), SIZE * SIZE)
    w2m = u(ks[8], (3, 3), 9);                 b2m = u(ks[9], (), 9)
    w3m = u(ks[10], (SIZE, 3, 3), 9);          b3m = u(ks[11], (SIZE,), 9)
    return (w1a, b1a, w2a, b2a, w3a, b3a,
            w1m, b1m, w2m, b2m, w3m, b3m)


if __name__ == "__main__":
    key = jax.random.PRNGKey(0)
    kp, kg, km, ka = jax.random.split(key, 4)
    params = init_params(kp)

    def check(B, block_b):
        kg2, km2, ka2 = jax.random.split(jax.random.fold_in(key, B), 3)
        g_weight = jax.random.normal(kg2, (B, SIZE), jnp.float32)
        max_list = jax.random.normal(km2, (B, SIZE), jnp.float32)
        avg_list = jax.random.normal(ka2, (B, SIZE), jnp.float32)

        diff_out, g_diff = fused_forward(g_weight, max_list, avg_list, params,
                                         block_b=block_b)
        jax.block_until_ready((diff_out, g_diff))

        ref_out, ref_gdiff = ref_forward(g_weight, max_list, avg_list, params)
        assert jnp.allclose(diff_out, ref_out, rtol=1e-4, atol=1e-4), \
            f"diff_output mismatch (B={B})"
        assert jnp.allclose(g_diff, ref_gdiff, rtol=1e-4, atol=1e-4), \
            f"g_diff mismatch (B={B})"

    check(B=2, block_b=1024)       # tiny batch: single full-array block
    check(B=200, block_b=128)      # exercises the grid + lane-padding path

    print("KERNEL_OK")
</pallas_src>

<mosaic_0001>
module attributes {stable_mosaic.version = 11 : i64} {
  func.func @_fused_kernel(%arg0: i32, %arg1: memref<6x2xf32, #tpu.memory_space<vmem>>, %arg2: memref<6x2xf32, #tpu.memory_space<vmem>>, %arg3: memref<6x2xf32, #tpu.memory_space<vmem>>, %arg4: memref<6x6x1xf32, #tpu.memory_space<vmem>>, %arg5: memref<6x6x1xf32, #tpu.memory_space<vmem>>, %arg6: memref<6x1xf32, #tpu.memory_space<vmem>>, %arg7: memref<6x1xf32, #tpu.memory_space<vmem>>, %arg8: memref<6x1xf32, #tpu.memory_space<vmem>>, %arg9: memref<6x2xf32, #tpu.memory_space<vmem>>, %arg10: memref<1x2xf32, #tpu.memory_space<vmem>>) attributes {dimension_semantics = [#tpu.dimension_semantics<parallel>], iteration_bounds = array<i64: 1>, scalar_prefetch = 0 : i64, scratch_operands = 0 : i64, tpu.core_type = #tpu.core_type<tc>, window_params = [{transform_indices = @transform_0, window_bounds = array<i64: 6, 2>}, {transform_indices = @transform_1, window_bounds = array<i64: 6, 2>}, {transform_indices = @transform_2, window_bounds = array<i64: 6, 2>}, {pipeline_mode = #tpu.pipeline_mode<synchronous>, transform_indices = @transform_3, window_bounds = array<i64: 6, 6, 1>}, {pipeline_mode = #tpu.pipeline_mode<synchronous>, transform_indices = @transform_4, window_bounds = array<i64: 6, 6, 1>}, {pipeline_mode = #tpu.pipeline_mode<synchronous>, transform_indices = @transform_5, window_bounds = array<i64: 6, 1>}, {pipeline_mode = #tpu.pipeline_mode<synchronous>, transform_indices = @transform_6, window_bounds = array<i64: 6, 1>}, {pipeline_mode = #tpu.pipeline_mode<synchronous>, transform_indices = @transform_7, window_bounds = array<i64: 6, 1>}, {transform_indices = @transform_8, window_bounds = array<i64: 6, 2>}, {transform_indices = @transform_9, window_bounds = array<i64: 1, 2>}]} {
    %c0 = arith.constant 0 : index
    %c0_0 = arith.constant 0 : index
    %0 = vector.load %arg1[%c0, %c0_0] : memref<6x2xf32, #tpu.memory_space<vmem>>, vector<6x2xf32>
    %c0_1 = arith.constant 0 : index
    %c0_2 = arith.constant 0 : index
    %1 = vector.load %arg2[%c0_1, %c0_2] : memref<6x2xf32, #tpu.memory_space<vmem>>, vector<6x2xf32>
    %c0_3 = arith.constant 0 : index
    %c0_4 = arith.constant 0 : index
    %2 = vector.load %arg3[%c0_3, %c0_4] : memref<6x2xf32, #tpu.memory_space<vmem>>, vector<6x2xf32>
    %3 = vector.shape_cast %2 : vector<6x2xf32> to vector<1x6x2xf32>
    %4 = vector.shape_cast %2 : vector<6x2xf32> to vector<6x1x2xf32>
    %5 = vector.broadcast %3 : vector<1x6x2xf32> to vector<6x6x2xf32>
    %6 = vector.broadcast %4 : vector<6x1x2xf32> to vector<6x6x2xf32>
    %7 = arith.subf %5, %6 : vector<6x6x2xf32>
    %8 = math.absf %7 : vector<6x6x2xf32>
    %9 = vector.shape_cast %1 : vector<6x2xf32> to vector<1x6x2xf32>
    %10 = vector.shape_cast %1 : vector<6x2xf32> to vector<6x1x2xf32>
    %11 = vector.broadcast %9 : vector<1x6x2xf32> to vector<6x6x2xf32>
    %12 = vector.broadcast %10 : vector<6x1x2xf32> to vector<6x6x2xf32>
    %13 = arith.subf %11, %12 : vector<6x6x2xf32>
    %14 = math.absf %13 : vector<6x6x2xf32>
    %15 = vector.shape_cast %0 : vector<6x2xf32> to vector<1x6x2xf32>
    %16 = vector.shape_cast %0 : vector<6x2xf32> to vector<6x1x2xf32>
    %17 = vector.broadcast %15 : vector<1x6x2xf32> to vector<6x6x2xf32>
    %18 = vector.broadcast %16 : vector<6x1x2xf32> to vector<6x6x2xf32>
    %19 = arith.subf %17, %18 : vector<6x6x2xf32>
    %20 = math.absf %19 : vector<6x6x2xf32>
    %cst = arith.constant 1.000000e+02 : f32
    %21 = vector.broadcast %cst : f32 to vector<6x6x2xf32>
    %22 = arith.mulf %21, %20 : vector<6x6x2xf32>
    %23 = math.tanh %22 : vector<6x6x2xf32>
    %24 = arith.mulf %20, %23 : vector<6x6x2xf32>
    %cst_5 = arith.constant dense<0.000000e+00> : vector<6x2xf32>
    %25 = vector.multi_reduction <add>, %24, %cst_5 [0] : vector<6x6x2xf32> to vector<6x2xf32>
    %cst_6 = arith.constant dense<0.000000e+00> : vector<2xf32>
    %26 = vector.multi_reduction <add>, %25, %cst_6 [0] : vector<6x2xf32> to vector<2xf32>
    %27 = vector.shape_cast %26 : vector<2xf32> to vector<1x2xf32>
    %cst_7 = arith.constant 5.000000e-01 : f32
    %28 = vector.broadcast %cst_7 : f32 to vector<1x2xf32>
    %29 = arith.mulf %28, %27 : vector<1x2xf32>
    %c0_8 = arith.constant 0 : index
    %c0_9 = arith.constant 0 : index
    %30 = vector.load %arg10[%c0_8, %c0_9] : memref<1x2xf32, #tpu.memory_space<vmem>>, vector<1x2xf32>
    tpu.vector_store %arg10[%c0_8, %c0_9], %29 {strides = array<i32>} : memref<1x2xf32, #tpu.memory_space<vmem>>, vector<1x2xf32>,
    %c0_10 = arith.constant 0 : index
    %c0_11 = arith.constant 0 : index
    %c0_12 = arith.constant 0 : index
    %31 = vector.load %arg4[%c0_10, %c0_11, %c0_12] : memref<6x6x1xf32, #tpu.memory_space<vmem>>, vector<6x6x1xf32>
    %32 = vector.broadcast %31 : vector<6x6x1xf32> to vector<6x6x2xf32>
    %33 = arith.mulf %8, %32 : vector<6x6x2xf32>
    %cst_13 = arith.constant dense<0.000000e+00> : vector<6x2xf32>
    %34 = vector.multi_reduction <add>, %33, %cst_13 [0] : vector<6x6x2xf32> to vector<6x2xf32>
    %cst_14 = arith.constant dense<0.000000e+00> : vector<2xf32>
    %35 = vector.multi_reduction <add>, %34, %cst_14 [0] : vector<6x2xf32> to vector<2xf32>
    %36 = vector.shape_cast %35 : vector<2xf32> to vector<1x2xf32>
    %c0_15 = arith.constant 0 : index
    %c0_16 = arith.constant 0 : index
    %c0_17 = arith.constant 0 : index
    %37 = vector.load %arg5[%c0_15, %c0_16, %c0_17] : memref<6x6x1xf32, #tpu.memory_space<vmem>>, vector<6x6x1xf32>
    %38 = vector.broadcast %37 : vector<6x6x1xf32> to vector<6x6x2xf32>
    %39 = arith.mulf %14, %38 : vector<6x6x2xf32>
    %cst_18 = arith.constant dense<0.000000e+00> : vector<6x2xf32>
    %40 = vector.multi_reduction <add>, %39, %cst_18 [0] : vector<6x6x2xf32> to vector<6x2xf32>
    %cst_19 = arith.constant dense<0.000000e+00> : vector<2xf32>
    %41 = vector.multi_reduction <add>, %40, %cst_19 [0] : vector<6x2xf32> to vector<2xf32>
    %42 = vector.shape_cast %41 : vector<2xf32> to vector<1x2xf32>
    %c0_20 = arith.constant 0 : index
    %c0_21 = arith.constant 0 : index
    %43 = vector.load %arg6[%c0_20, %c0_21] : memref<6x1xf32, #tpu.memory_space<vmem>>, vector<6x1xf32>
    %44 = vector.broadcast %43 : vector<6x1xf32> to vector<6x2xf32>
    %45 = vector.broadcast %36 : vector<1x2xf32> to vector<6x2xf32>
    %46 = arith.mulf %44, %45 : vector<6x2xf32>
    %c0_22 = arith.constant 0 : index
    %c0_23 = arith.constant 0 : index
    %47 = vector.load %arg7[%c0_22, %c0_23] : memref<6x1xf32, #tpu.memory_space<vmem>>, vector<6x1xf32>
    %48 = vector.broadcast %47 : vector<6x1xf32> to vector<6x2xf32>
    %49 = vector.broadcast %42 : vector<1x2xf32> to vector<6x2xf32>
    %50 = arith.mulf %48, %49 : vector<6x2xf32>
    %51 = arith.addf %46, %50 : vector<6x2xf32>
    %c0_24 = arith.constant 0 : index
    %c0_25 = arith.constant 0 : index
    %52 = vector.load %arg8[%c0_24, %c0_25] : memref<6x1xf32, #tpu.memory_space<vmem>>, vector<6x1xf32>
    %53 = vector.broadcast %52 : vector<6x1xf32> to vector<6x2xf32>
    %54 = arith.addf %51, %53 : vector<6x2xf32>
    %55 = vector.shape_cast %54 : vector<6x2xf32> to vector<6x1x2xf32>
    %56 = vector.broadcast %55 : vector<6x1x2xf32> to vector<6x6x2xf32>
    %57 = arith.mulf %20, %56 : vector<6x6x2xf32>
    %cst_26 = arith.constant dense<0.000000e+00> : vector<6x2xf32>
    %58 = vector.multi_reduction <add>, %57, %cst_26 [0] : vector<6x6x2xf32> to vector<6x2xf32>
    %c0_27 = arith.constant 0 : index
    %c0_28 = arith.constant 0 : index
    %59 = vector.load %arg9[%c0_27, %c0_28] : memref<6x2xf32, #tpu.memory_space<vmem>>, vector<6x2xf32>
    tpu.vector_store %arg9[%c0_27, %c0_28], %58 {strides = array<i32>} : memref<6x2xf32, #tpu.memory_space<vmem>>, vector<6x2xf32>,
    return
  }
  func.func @transform_0(%arg0: i32) -> (i32, i32) {
    %c0_i32 = arith.constant 0 : i32
    %c0_i32_0 = arith.constant 0 : i32
    return %c0_i32, %arg0 : i32, i32
  }
  func.func @transform_1(%arg0: i32) -> (i32, i32) {
    %c0_i32 = arith.constant 0 : i32
    %c0_i32_0 = arith.constant 0 : i32
    return %c0_i32, %arg0 : i32, i32
  }
  func.func @transform_2(%arg0: i32) -> (i32, i32) {
    %c0_i32 = arith.constant 0 : i32
    %c0_i32_0 = arith.constant 0 : i32
    return %c0_i32, %arg0 : i32, i32
  }
  func.func @transform_3(%arg0: i32) -> (i32, i32, i32) {
    %c0_i32 = arith.constant 0 : i32
    %c0_i32_0 = arith.constant 0 : i32
    %c0_i32_1 = arith.constant 0 : i32
    %c0_i32_2 = arith.constant 0 : i32
    return %c0_i32, %c0_i32_0, %c0_i32_1 : i32, i32, i32
  }
  func.func @transform_4(%arg0: i32) -> (i32, i32, i32) {
    %c0_i32 = arith.constant 0 : i32
    %c0_i32_0 = arith.constant 0 : i32
    %c0_i32_1 = arith.constant 0 : i32
    %c0_i32_2 = arith.constant 0 : i32
    return %c0_i32, %c0_i32_0, %c0_i32_1 : i32, i32, i32
  }
  func.func @transform_5(%arg0: i32) -> (i32, i32) {
    %c0_i32 = arith.constant 0 : i32
    %c0_i32_0 = arith.constant 0 : i32
    %c0_i32_1 = arith.constant 0 : i32
    return %c0_i32, %c0_i32_0 : i32, i32
  }
  func.func @transform_6(%arg0: i32) -> (i32, i32) {
    %c0_i32 = arith.constant 0 : i32
    %c0_i32_0 = arith.constant 0 : i32
    %c0_i32_1 = arith.constant 0 : i32
    return %c0_i32, %c0_i32_0 : i32, i32
  }
  func.func @transform_7(%arg0: i32) -> (i32, i32) {
    %c0_i32 = arith.constant 0 : i32
    %c0_i32_0 = arith.constant 0 : i32
    %c0_i32_1 = arith.constant 0 : i32
    return %c0_i32, %c0_i32_0 : i32, i32
  }
  func.func @transform_8(%arg0: i32) -> (i32, i32) {
    %c0_i32 = arith.constant 0 : i32
    %c0_i32_0 = arith.constant 0 : i32
    return %c0_i32, %arg0 : i32, i32
  }
  func.func @transform_9(%arg0: i32) -> (i32, i32) {
    %c0_i32 = arith.constant 0 : i32
    %c0_i32_0 = arith.constant 0 : i32
    return %c0_i32, %arg0 : i32, i32
  }
}

</mosaic_0001>

<bundles_post_ra>
// kernel: tpu_custom_call.1
= control target key start
LH: loop header
LB: loop body
LE: loop exit
PB: predicated region body
PF: predicated region fallthrough
CT: control target
= control target key end

     0   :  { %v406_v2 = vmov 0   ;;  %s613_s0 = inlined_call_operand.vmem [shape: f32[6,2], index: 0, kind: input, shape index: {}]   ;;  %s614_s1 = inlined_call_operand.vmem [shape: f32[6,2], index: 1, kind: input, shape index: {}]   ;;  %s615_s2 = inlined_call_operand.vmem [shape: f32[6,2], index: 2, kind: input, shape index: {}]   ;;  %s616_s3 = inlined_call_operand.vmem [shape: f32[6,6,1], index: 3, kind: input, shape index: {}]   ;;  %s617_s4 = inlined_call_operand.vmem [shape: f32[6,6,1], index: 4, kind: input, shape index: {}]   ;;  %s618_s5 = inlined_call_operand.vmem [shape: f32[6,1], index: 5, kind: input, shape index: {}]   ;;  %s619_s6 = inlined_call_operand.vmem [shape: f32[6,1], index: 6, kind: input, shape index: {}]   ;;  %s620_s7 = inlined_call_operand.vmem [shape: f32[6,1], index: 7, kind: input, shape index: {}]   ;;  %s621_s8 = inlined_call_operand.vmem [shape: f32[6,2], index: 8, kind: output, shape index: {0}]   ;;  %s622_s9 = inlined_call_operand.hbm [shape: f32[1,2], index: 9, kind: output, shape index: {1}]  }
   0x1   :  { %v225_v0 = vld [vmem:[%s617_s4] sm:$0x3f]  ;;  %v167_v1 = vld [vmem:[%s616_s3 + $0x10] sm:$0x3f]  ;;  %367 = vset.pattern.permute.xlu2 %v406_v2  ;;  %366 = vset.pattern.permute.xlu1 %v406_v2 }
   0x2   :  { %v165_v3 = vld [vmem:[%s616_s3] sm:$0x3f]  ;;  %365 = vset.pattern.permute.xlu0 %v406_v2  ;;  %233 = vperm.xlu1 %366, %v225_v0  }
   0x3   :  { %183 = vperm.xlu2 %367, %v167_v1   ;;  %173 = vperm.xlu0 %365, %v165_v3  }
   0x4   :  { %15 = vsyncpa [#allocation3], 0  ;;  %v226_v4 = vld [vmem:[%s617_s4 + $0x8] sm:$0x3f]  ;;  %v227_v5 = vld [vmem:[%s617_s4 + $0x10] sm:$0x3f] }
   0x5   :  { %v166_v6 = vld [vmem:[%s616_s3 + $0x8] sm:$0x3f]  ;;  %v228_v7 = vld [vmem:[%s617_s4 + $0x18] sm:$0x3f]  ;;  %v169_v8 = vld [vmem:[%s616_s3 + $0x20] sm:$0x3f] }
   0x6   :  { %v168_v9 = vld [vmem:[%s616_s3 + $0x18] sm:$0x3f]  ;;  %v170_v10 = vld [vmem:[%s616_s3 + $0x28] sm:$0x3f]  ;;  %v229_v12 = vld [vmem:[%s617_s4 + $0x20] sm:$0x3f] }
   0x7   :  { %v230_v11 = vld [vmem:[%s617_s4 + $0x28] sm:$0x3f]  ;;  %v292_v13 = vld [vmem:[%s619_s6] sm:$0x3f]  ;;  %vm143_vm0 = vcmask 13312   ;;  %s352_s20 = sshll.u32 %s622_s9, 4  ;;  %s353_s20 = int_to_ptr.hbm [resolvable:$true] %s352_s20 }
   0x8   :  { %v300_v14 = vld [vmem:[%s620_s7] sm:$0x3f]  ;;  %vm163_vm1 = vcmask 8192  }
   0x9   :  { %v285_v15 = vld [vmem:[%s618_s5] sm:$0x3f] }
   0xa   :  { %238 = vperm.xlu1 %366, %v226_v4   ;;  %v506_v16 = vld [vmem:[%s615_s2] sm:$0x3f] }
   0xb   :  { %243 = vperm.xlu2 %367, %v227_v5   ;;  %178 = vperm.xlu0 %365, %v166_v6   ;;  %v37_v17 = vrot.slane %v506_v16, 2  ;;  %v512_v18 = vld [vmem:[%s614_s1] sm:$0x3f]  ;;  %v36_v26 = vrot.slane %v506_v16, 1  ;;  %v41_v42 = vperm.slane %v506_v16, 0  ;;  %v38_v43 = vrot.slane %v506_v16, 3 }
   0xc   :  { %v32_v19 = vld [vmem:[%s613_s0] sm:$0x3f]  ;;  %v67_v22 = vrot.slane %v512_v18, 2  ;;  %v66_v34 = vrot.slane %v512_v18, 1  ;;  %v71_v51 = vperm.slane %v512_v18, 0  ;;  %v39_v55 = vrot.slane %v506_v16, 4 }
   0xd   :  { %v43_v20 = vperm.slane %v37_v17, 0  ;;  %v96_v21 = vrot.slane %v32_v19, 1  ;;  %v97_v23 = vrot.slane %v32_v19, 2  ;;  %v101_v24 = vperm.slane %v32_v19, 0  ;;  %s407_s0 = smov [#allocation2]  }
   0xe   :  { %v73_v32 = vperm.slane %v67_v22, 0  ;;  %v98_v33 = vrot.slane %v32_v19, 3  ;;  %v42_v38 = vperm.slane %v36_v26, 0  ;;  %v99_v39 = vrot.slane %v32_v19, 4  ;;  %s350_s1 = sshll.u32 %s407_s0, 4  ;;  %s351_s1 = int_to_ptr.vmem [resolvable:$true] %s350_s1 }
   0xf   :  { %v102_v25 = vperm.slane %v96_v21, 0  ;;  %v55_v28 = vsub.f32 %v506_v16, %v43_v20  ;;  %v103_v29 = vperm.slane %v97_v23, 0  ;;  %v113_v30 = vsub.f32 %v32_v19, %v101_v24 }
  0x10   :  { %v104_v40 = vperm.slane %v98_v33, 0  ;;  %v100_v46 = vrot.slane %v32_v19, 5  ;;  %v105_v47 = vperm.slane %v99_v39, 0  ;;  %v85_v50 = vsub.f32 %v512_v18, %v73_v32 }
  0x11   :  { %v114_v31 = vsub.f32 %v32_v19, %v102_v25  ;;  %v115_v35 = vsub.f32 %v32_v19, %v103_v29  ;;  %v523_v36 = vand.u32 2147483647, %v113_v30  ;;  %v61_v41 = vand.u32 2147483647, %v55_v28 }
  0x12   :  { %248 = vperm.xlu1 %366, %v228_v7   ;;  %v116_v48 = vsub.f32 %v32_v19, %v104_v40  ;;  %v72_v53 = vperm.slane %v66_v34, 0  ;;  %v54_v56 = vsub.f32 %v506_v16, %v42_v38  ;;  %v106_v57 = vperm.slane %v100_v46, 0 }
  0x13   :  { %193 = vperm.xlu2 %367, %v169_v8   ;;  %188 = vperm.xlu0 %365, %v168_v9   ;;  %v525_v37 = vand.u32 2147483647, %v114_v31  ;;  %v529_v44 = vand.u32 2147483647, %v115_v35  ;;  %v125_v49 = vmul.f32 100.0, %v523_v36  ;;  %v117_v58 = vsub.f32 %v32_v19, %v105_v47 }
  0x14   :  { %v53_v59 = vsub.f32 %v506_v16, %v41_v42  ;;  %v540_v60 = vand.u32 2147483647, %v116_v48  ;;  %v68_v62 = vrot.slane %v512_v18, 3  ;;  %v44_v63 = vperm.slane %v38_v43, 0 }
  0x15   :  { %v126_v54 = vmul.f32 100.0, %v525_v37  ;;  %v127_v61 = vmul.f32 100.0, %v529_v44  ;;  %368 = vtanh.f32 %v125_v49  ;;  %v118_v0 = vsub.f32 %v32_v19, %v106_v57 }
  0x16   :  { %v544_v1 = vand.u32 2147483647, %v117_v58  ;;  %v83_v3 = vsub.f32 %v512_v18, %v71_v51  ;;  %v84_v4 = vsub.f32 %v512_v18, %v72_v53  ;;  %v128_v5 = vmul.f32 100.0, %v540_v60 }
  0x17   :  { %370 = vtanh.f32 %v126_v54  ;;  %v60_v6 = vand.u32 2147483647, %v54_v56  ;;  %v551_v7 = vand.u32 2147483647, %v118_v0  ;;  %v45_v9 = vperm.slane %v39_v55, 0 }
  0x18   :  { %v129_v8 = vmul.f32 100.0, %v544_v1  ;;  %372 = vtanh.f32 %v127_v61  ;;  %v91_v19 = vand.u32 2147483647, %v85_v50  ;;  %v89_v20 = vand.u32 2147483647, %v83_v3 }
  0x19   :  { %374 = vtanh.f32 %v128_v5  ;;  %v40_v22 = vrot.slane %v506_v16, 5  ;;  %v69_v23 = vrot.slane %v512_v18, 4  ;;  %v90_v24 = vand.u32 2147483647, %v84_v4 }
  0x1a   :  { %198 = vperm.xlu1 %366, %v170_v10   ;;  %v70_v10 = vrot.slane %v512_v18, 5  ;;  %376 = vtanh.f32 %v129_v8  ;;  %v57_v30 = vsub.f32 %v506_v16, %v45_v9 }
  0x1b   :  { %258 = vperm.xlu2 %367, %v230_v11   ;;  %253 = vperm.xlu0 %365, %v229_v12   ;;  %v59_v11 = vand.u32 2147483647, %v53_v59  ;;  %v369_v17 = vpop.eup %368  ;;  %v46_v43 = vperm.slane %v40_v22, 0  ;;  %v75_v46 = vperm.slane %v69_v23, 0 }
  0x1c   :  { %v137_v26 = vmul.f32 %v369_v17, %v523_v36  ;;  %v76_v31 = vperm.slane %v70_v10, 0  ;;  %v63_v57 = vand.u32 2147483647, %v57_v30 }
  0x1d   :  { %v371_v28 = vpop.eup %370  ;;  %v58_v0 = vsub.f32 %v506_v16, %v46_v43  ;;  %v87_v8 = vsub.f32 %v512_v18, %v75_v46 }
  0x1e   :  { %v373_v33 = vpop.eup %372  ;;  %v138_v38 = vmul.f32 %v371_v28, %v525_v37  ;;  %v144_v39 = vsel %vm143_vm0, %v137_v26, 0.0 }
  0x1f   :  { %v375_v40 = vpop.eup %374  ;;  %v139_v47 = vmul.f32 %v373_v33, %v529_v44  ;;  %v64_v22 = vand.u32 2147483647, %v58_v0 }
  0x20   :  { %v140_v49 = vmul.f32 %v375_v40, %v540_v60  ;;  %v145_v50 = vsel %vm143_vm0, %v138_v38, 0.0 }
  0x21   :  { %v146_v54 = vadd.f32 %v145_v50, %v144_v39  ;;  %v147_v55 = vsel %vm143_vm0, %v139_v47, 0.0 }
  0x22   :  { %295 = vperm.xlu1 %366, %v292_v13   ;;  %v74_v13 = vperm.slane %v68_v62, 0  ;;  %v88_v62 = vsub.f32 %v512_v18, %v76_v31 }
  0x23   :  { %303 = vperm.xlu2 %367, %v300_v14   ;;  %288 = vperm.xlu0 %365, %v285_v15   ;;  %v56_v14 = vsub.f32 %v506_v16, %v44_v63  ;;  %v130_v15 = vmul.f32 100.0, %v551_v7  ;;  %v148_v4 = vadd.f32 %v147_v55, %v146_v54 }
  0x24   :  { %v86_v34 = vsub.f32 %v512_v18, %v74_v13  ;;  %v94_v18 = vand.u32 2147483647, %v88_v62 }
  0x25   :  { %378 = vtanh.f32 %v130_v15  ;;  %v62_v35 = vand.u32 2147483647, %v56_v14 }
  0x26   :  { %v92_v61 = vand.u32 2147483647, %v86_v34 }
  0x5d   :  { %v519_v27 = vpop.permute.xlu2 %183 }
  0x5e   :  { %v203_v29 = vmul.f32 %v519_v27, %v61_v41  ;;  %v377_v27 = vpop.eup %376 }
  0x5f   :  { %v141_v53 = vmul.f32 %v377_v27, %v544_v1  ;;  %v379_v56 = vpop.eup %378 }
  0x60   :  { %v142_v3 = vmul.f32 %v379_v56, %v551_v7  ;;  %v210_v10 = vsel %vm143_vm0, %v203_v29, 0.0 }
  0x61   :  { %v151_v9 = vsel %vm143_vm0, %v141_v53, 0.0 }
  0x62   :  { %v153_v17 = vsel %vm143_vm0, %v142_v3, 0.0 }
  0x65   :  { %v546_v2 = vpop.permute.xlu2 %243 }
  0x6d   :  { %v194_v51 = vpop.permute.xlu2 %193 }
  0x74   :  { %v531_v45 = vpop.permute.xlu1 %233 }
  0x75   :  { %v174_v52 = vpop.permute.xlu0 %173  ;;  %v261_v41 = vmul.f32 %v531_v45, %v89_v20  ;;  %v149_v45 = vsel %vm143_vm0, %v140_v49, 0.0  ;;  %v205_v20 = vmul.f32 %v194_v51, %v63_v57  ;;  %v259_v30 = vpop.permute.xlu2 %258 }
  0x76   :  { %v201_v32 = vmul.f32 %v174_v52, %v59_v11  ;;  %v263_v11 = vmul.f32 %v546_v2, %v91_v19  ;;  %v150_v13 = vadd.f32 %v149_v45, %v148_v4 }
  0x77   :  { %v214_v29 = vsel %vm143_vm0, %v205_v20, 0.0 }
  0x78   :  { %v207_v52 = vsel %vm143_vm0, %v201_v32, 0.0  ;;  %v152_v23 = vadd.f32 %v151_v9, %v150_v13  ;;  %v270_v28 = vsel %vm143_vm0, %v263_v11, 0.0 }
  0x7a   :  { %v154_v26 = vadd.f32 %v153_v17, %v152_v23 }
  0x7c   :  { %v239_v12 = vpop.permute.xlu1 %238  ;;  %v155_v34 = vsel %vm143_vm0, %v154_v26, 0.0 }
  0x7d   :  { %v179_v21 = vpop.permute.xlu0 %178  ;;  %v262_v48 = vmul.f32 %v239_v12, %v90_v24  ;;  %v267_v12 = vsel %vm143_vm0, %v261_v41, 0.0  ;;  %v156_v40 = vrot.slane %v155_v34, 4  ;;  %v304_v13 = vpop.permute.xlu2 %303 }
  0x7e   :  { %v202_v25 = vmul.f32 %v179_v21, %v60_v6 }
  0x7f   :  { %v268_v5 = vsel %vm143_vm0, %v262_v48, 0.0  ;;  %v157_v27 = vadd.f32 %v156_v40, %v155_v34 }
  0x80   :  { %v208_v42 = vsel %vm143_vm0, %v202_v25, 0.0  ;;  %v269_v21 = vadd.f32 %v268_v5, %v267_v12  ;;  %v93_v25 = vand.u32 2147483647, %v87_v8 }
  0x81   :  { %v209_v58 = vadd.f32 %v208_v42, %v207_v52  ;;  %v158_v50 = vrot.slane %v157_v27, 2 }
  0x82   :  { %v271_v31 = vadd.f32 %v270_v28, %v269_v21 }
  0x83   :  { %v211_v15 = vadd.f32 %v210_v10, %v209_v58  ;;  %v159_v53 = vadd.f32 %v158_v50, %v157_v27 }
  0x84   :  { %v249_v59 = vpop.permute.xlu1 %248 }
  0x85   :  { %v189_v63 = vpop.permute.xlu0 %188  ;;  %v264_v14 = vmul.f32 %v249_v59, %v92_v61  ;;  %v160_v57 = vrot.slane %v159_v53, 1 }
  0x86   :  { %v204_v6 = vmul.f32 %v189_v63, %v62_v35  ;;  %v266_v35 = vmul.f32 %v259_v30, %v94_v18 }
  0x87   :  { %v272_v2 = vsel %vm143_vm0, %v264_v14, 0.0  ;;  %v161_v61 = vadd.f32 %v160_v57, %v159_v53 }
  0x88   :  { %v212_v16 = vsel %vm143_vm0, %v204_v6, 0.0  ;;  %v273_v42 = vadd.f32 %v272_v2, %v271_v31  ;;  %v276_v48 = vsel %vm143_vm0, %v266_v35, 0.0 }
  0x89   :  { %v213_v24 = vadd.f32 %v212_v16, %v211_v15  ;;  %v162_v63 = vmul.f32 0.5, %v161_v61 }
  0x8b   :  { %v215_v38 = vadd.f32 %v214_v29, %v213_v24  ;;  %164 = vst.msk [vmem:[#allocation2] sm:$0x1] %vm163_vm1, %v162_v63 }
  0x8c   :  { %v199_v19 = vpop.permute.xlu1 %198  ;;  %355 = dma.vmem_to_hbm [thread:$0]  %s351_s1, 16, %s353_s20, [#allocation3]  }
  0x8d   :  { %v206_v32 = vmul.f32 %v199_v19, %v64_v22  ;;  %v254_v33 = vpop.permute.xlu0 %253 }
  0x8e   :  { %v265_v39 = vmul.f32 %v254_v33, %v93_v25 }
  0x8f   :  { %v216_v43 = vsel %vm143_vm0, %v206_v32, 0.0 }
  0x90   :  { %v217_v46 = vadd.f32 %v216_v43, %v215_v38  ;;  %v274_v47 = vsel %vm143_vm0, %v265_v39, 0.0 }
  0x91   :  { %v275_v41 = vadd.f32 %v274_v47, %v273_v42 }
  0x92   :  { %v218_v49 = vsel %vm143_vm0, %v217_v46, 0.0 }
  0x93   :  { %v219_v51 = vrot.slane %v218_v49, 4  ;;  %v277_v52 = vadd.f32 %v276_v48, %v275_v41 }
  0x94   :  { %v296_v8 = vpop.permute.xlu1 %295 }
  0x95   :  { %v278_v54 = vsel %vm143_vm0, %v277_v52, 0.0  ;;  %v220_v55 = vadd.f32 %v219_v51, %v218_v49  ;;  %v289_v9 = vpop.permute.xlu0 %288 }
  0x96   :  { %v279_v56 = vrot.slane %v278_v54, 4 }
  0x97   :  { %v221_v58 = vrot.slane %v220_v55, 2 }
  0x98   :  { %v280_v59 = vadd.f32 %v279_v56, %v278_v54 }
  0x99   :  { %v222_v45 = vadd.f32 %v221_v58, %v220_v55 }
  0x9a   :  { %v281_v62 = vrot.slane %v280_v59, 2 }
  0x9b   :  { %v223_v0 = vrot.slane %v222_v45, 1 }
  0x9c   :  { %v282_v3 = vadd.f32 %v281_v62, %v280_v59 }
  0x9d   :  { %v224_v5 = vadd.f32 %v223_v0, %v222_v45 }
  0x9e   :  { %v283_v4 = vrot.slane %v282_v3, 1 }
  0x9f   :  { %v291_v11 = vmul.f32 %v289_v9, %v224_v5 }
  0xa0   :  { %v284_v6 = vadd.f32 %v283_v4, %v282_v3 }
  0xa2   :  { %v298_v10 = vmul.f32 %v296_v8, %v284_v6 }
  0xa4   :  { %v299_v12 = vadd.f32 %v298_v10, %v291_v11 }
  0xa6   :  { %v306_v14 = vadd.f32 %v304_v13, %v299_v12 }
  0xa8   :  { %v308_v15 = vrot.slane %v306_v14, 1  ;;  %v309_v16 = vrot.slane %v306_v14, 2  ;;  %v310_v17 = vrot.slane %v306_v14, 3  ;;  %v311_v20 = vrot.slane %v306_v14, 4 }
  0xa9   :  { %v313_v21 = vperm.slane %v306_v14, 0  ;;  %v312_v22 = vrot.slane %v306_v14, 5 }
  0xaa   :  { %v314_v23 = vperm.slane %v308_v15, 0  ;;  %v315_v18 = vperm.slane %v309_v16, 0  ;;  %v316_v24 = vperm.slane %v310_v17, 0  ;;  %v317_v26 = vperm.slane %v311_v20, 0 }
  0xab   :  { %v325_v25 = vmul.f32 %v313_v21, %v523_v36  ;;  %v318_v19 = vperm.slane %v312_v22, 0 }
  0xac   :  { %v326_v28 = vmul.f32 %v314_v23, %v525_v37  ;;  %v327_v2 = vmul.f32 %v315_v18, %v529_v44  ;;  %v328_v31 = vmul.f32 %v316_v24, %v540_v60  ;;  %v329_v34 = vmul.f32 %v317_v26, %v544_v1 }
  0xad   :  { %v331_v29 = vsel %vm143_vm0, %v325_v25, 0.0  ;;  %v330_v36 = vmul.f32 %v318_v19, %v551_v7 }
  0xae   :  { %v332_v30 = vsel %vm143_vm0, %v326_v28, 0.0  ;;  %v334_v33 = vsel %vm143_vm0, %v327_v2, 0.0  ;;  %v336_v38 = vsel %vm143_vm0, %v328_v31, 0.0  ;;  %v338_v44 = vsel %vm143_vm0, %v329_v34, 0.0 }
  0xaf   :  { %v333_v32 = vadd.f32 %v332_v30, %v331_v29  ;;  %v340_v40 = vsel %vm143_vm0, %v330_v36, 0.0 }
  0xb1   :  { %v335_v35 = vadd.f32 %v334_v33, %v333_v32 }
  0xb3   :  { %v337_v37 = vadd.f32 %v336_v38, %v335_v35 }
  0xb5   :  { %v339_v39 = vadd.f32 %v338_v44, %v337_v37 }
  0xb7   :  { %v341_v42 = vadd.f32 %v340_v40, %v339_v39 }
  0xb9   :  { %342 = vst.msk [vmem:[%s621_s8] sm:$0x3f] %vm143_vm0, %v341_v42 }
  0xba   :  { %404 = dma.done.wait [#allocation3], 16  }
  0xbb   :  { %405 = vsyncadd [#allocation3], 4294967280 }
  0xbc   :  { %362 = vsyncpa [#allocation3], 1 }

</bundles_post_ra>
